<compile_context>
chip_gen: v7x
topology: tpu7x:2x2x1
jax: 0.10.0
libtpu: 0.0.40
codegen_flags: <defaults>
</compile_context>

<pallas_src>
import jax
import jax.numpy as jnp
from jax.experimental import pallas as pl
from jax.experimental.pallas import tpu as pltpu


# ---------------------------------------------------------------------------
# Helpers
# ---------------------------------------------------------------------------
def _round_up(n, m):
    return ((n + m - 1) // m) * m


def _pad2(x, rows, cols):
    r, c = x.shape
    return jnp.pad(x, ((0, rows - r), (0, cols - c)))


# ---------------------------------------------------------------------------
# Kernel: one grid step == one LSTM timestep.
# ---------------------------------------------------------------------------
def _lstm_seq_kernel(h0_ref, c0_ref, x_ref, wh_ref, wx_ref, bg_ref,
                     wy_ref, by_ref, h_ref, c_ref, y_ref):
    # h0_ref, c0_ref : [Bp, HP]   f32   initial state (only read at t == 0)
    # x_ref          : [Bp, XP]   f32   this timestep's input (streamed)
    # wh_ref         : [HP, 4HP]  bf16  stacked per-gate W   (VMEM-resident)
    # wx_ref         : [XP, 4HP]  bf16  stacked per-gate U   (VMEM-resident)
    # bg_ref         : [1, 4HP]   f32   w_bias + u_bias per gate
    # wy_ref         : [HP, OP]   bf16  output projection    (VMEM-resident)
    # by_ref         : [1, OP]    f32
    # h_ref, c_ref   : [Bp, HP]   f32   outputs; constant block index => stay
    #                  VMEM-resident across the time grid and act as the carry
    # y_ref          : [Bp, OP]   f32   per-timestep output block
    t = pl.program_id(0)
    HP = h_ref.shape[1]

    @pl.when(t == 0)
    def _():
        h_ref[...] = h0_ref[...]
        c_ref[...] = c0_ref[...]

    h = h_ref[...]                                     # f32 carried state

    # Gate GEMMs: bf16 operands on the MXU, f32 accumulation, f32 bias on VPU.
    gates = (
        jnp.dot(h.astype(wh_ref.dtype), wh_ref[...],
                preferred_element_type=jnp.float32)
        + jnp.dot(x_ref[...].astype(wx_ref.dtype), wx_ref[...],
                  preferred_element_type=jnp.float32)
        + bg_ref[...]
    )                                                  # [Bp, 4HP] f32

    # 128-lane-aligned gate slices -> free vreg reinterpretation.
    ft = jax.nn.sigmoid(gates[:, 0 * HP:1 * HP])
    it = jax.nn.sigmoid(gates[:, 1 * HP:2 * HP])
    ot = jax.nn.sigmoid(gates[:, 2 * HP:3 * HP])
    ct_bar = jnp.tanh(gates[:, 3 * HP:4 * HP])

    # Cell / hidden state update in f32 (VPU + EUP).
    ct = ft * c_ref[...] + it * ct_bar
    ht = ot * jnp.tanh(ct)

    # Output projection: bf16 operands, f32 accumulate, f32 bias.
    yt = jnp.dot(ht.astype(wy_ref.dtype), wy_ref[...],
                 preferred_element_type=jnp.float32) + by_ref[...]

    h_ref[...] = ht
    c_ref[...] = ct
    y_ref[...] = yt.astype(y_ref.dtype)


# ---------------------------------------------------------------------------
# Sequence wrapper: T timesteps in ONE pallas_call.
# ---------------------------------------------------------------------------
def lstm_sequence_pallas(h0, c0, x_seq, params):
    """Run T LSTM-cell steps. x_seq: [T, B, X] -> (hT, cT, y_seq[T,B,OUT])."""
    dims = params["dims"]
    H, X, OUT = dims["H"], dims["X"], dims["OUT"]
    HP, XP, OUTP = dims["HP"], dims["XP"], dims["OUTP"]
    T, B, Xin = x_seq.shape
    assert h0.shape == (B, H) and c0.shape == (B, H) and Xin == X
    Bp = _round_up(max(B, 1), 8)

    h0_p = _pad2(h0.astype(jnp.float32), Bp, HP)
    c0_p = _pad2(c0.astype(jnp.float32), Bp, HP)
    x_p = jnp.pad(x_seq.astype(jnp.float32),
                  ((0, 0), (0, Bp - B), (0, XP - X)))

    wh, wx, bg = params["wh"], params["wx"], params["bg"]
    wy, by = params["wy"], params["by"]

    flops = T * (2 * Bp * HP * 4 * HP + 2 * Bp * XP * 4 * HP
                 + 2 * Bp * HP * OUTP)
    transcendentals = T * 5 * Bp * HP          # 3 sigmoid + 2 tanh per element
    bytes_accessed = (wh.size * 2 + wx.size * 2 + wy.size * 2
                      + (bg.size + by.size) * 4
                      + (h0_p.size + c0_p.size) * 4 * 2
                      + x_p.size * 4 + T * Bp * OUTP * 4)

    state_spec = pl.BlockSpec((Bp, HP), lambda t: (0, 0))

    grid_spec = pltpu.PrefetchScalarGridSpec(
        num_scalar_prefetch=0,
        grid=(T,),
        in_specs=[
            state_spec,                                           # h0
            state_spec,                                           # c0
            pl.BlockSpec((None, Bp, XP), lambda t: (t, 0, 0)),    # x_t streamed
            pl.BlockSpec((HP, 4 * HP), lambda t: (0, 0)),         # wh resident
            pl.BlockSpec((XP, 4 * HP), lambda t: (0, 0)),         # wx resident
            pl.BlockSpec((1, 4 * HP), lambda t: (0, 0)),          # bg resident
            pl.BlockSpec((HP, OUTP), lambda t: (0, 0)),           # wy resident
            pl.BlockSpec((1, OUTP), lambda t: (0, 0)),            # by resident
        ],
        out_specs=(
            state_spec,                                           # hT (carry)
            state_spec,                                           # cT (carry)
            pl.BlockSpec((None, Bp, OUTP), lambda t: (t, 0, 0)),  # y_t
        ),
    )

    hT, cT, y_seq = pl.pallas_call(
        _lstm_seq_kernel,
        grid_spec=grid_spec,
        out_shape=(
            jax.ShapeDtypeStruct((Bp, HP), jnp.float32),
            jax.ShapeDtypeStruct((Bp, HP), jnp.float32),
            jax.ShapeDtypeStruct((T, Bp, OUTP), jnp.float32),
        ),
        cost_estimate=pl.CostEstimate(flops=flops,
                                      transcendentals=transcendentals,
                                      bytes_accessed=bytes_accessed),
        compiler_params=pltpu.CompilerParams(
            dimension_semantics=("arbitrary",),   # true recurrence over time
            vmem_limit_bytes=64 * 1024 * 1024),
    )(h0_p, c0_p, x_p, wh, wx, bg, wy, by)

    # Slice padding off so garbage lanes never leave the wrapper.
    return hT[:B, :H], cT[:B, :H], y_seq[:, :B, :OUT]


def lstm_cell_pallas(ht_1, ct_1, xt, params):
    """Single LSTMCell forward (the PyTorch module semantics): T == 1."""
    ht, ct, y_seq = lstm_sequence_pallas(ht_1, ct_1, xt[None], params)
    return ht, ct, y_seq[0]


# ---------------------------------------------------------------------------
# Parameter construction (torch.nn.Linear layouts) packed to kernel layout.
# ---------------------------------------------------------------------------
def init_params(key, h_dim, inp_x_dim, out_x_dim):
    keys = jax.random.split(key, 18)
    k = iter(keys)

    def lin(kw, kb, out_d, in_d):
        # torch.nn.Linear: weight [out_d, in_d], bias [out_d]; y = x @ W.T + b
        w = jax.random.normal(kw, (out_d, in_d), jnp.float32) * 0.1
        b = jax.random.normal(kb, (out_d,), jnp.float32) * 0.1
        return w, b

    raw = {}
    for name in ("f", "i", "o", "c"):
        raw["w" + name] = lin(next(k), next(k), h_dim, h_dim)
        raw["u" + name] = lin(next(k), next(k), h_dim, inp_x_dim)
    raw["xh"] = lin(next(k), next(k), out_x_dim, h_dim)

    HP = _round_up(h_dim, 128)
    XP = _round_up(inp_x_dim, 128)
    OUTP = _round_up(out_x_dim, 128)

    wh = jnp.zeros((HP, 4 * HP), jnp.float32)
    wx = jnp.zeros((XP, 4 * HP), jnp.float32)
    bg = jnp.zeros((1, 4 * HP), jnp.float32)
    for g, name in enumerate(("f", "i", "o", "c")):          # gate order f,i,o,c
        w_w, w_b = raw["w" + name]
        u_w, u_b = raw["u" + name]
        col = g * HP
        wh = wh.at[:h_dim, col:col + h_dim].set(w_w.T)          # h @ W.T
        wx = wx.at[:inp_x_dim, col:col + h_dim].set(u_w.T)      # x @ U.T
        bg = bg.at[0, col:col + h_dim].set(w_b + u_b)           # exact f32 bias

    xh_w, xh_b = raw["xh"]
    wy = jnp.zeros((HP, OUTP), jnp.float32).at[:h_dim, :out_x_dim].set(xh_w.T)
    by = jnp.zeros((1, OUTP), jnp.float32).at[0, :out_x_dim].set(xh_b)

    packed = dict(
        wh=wh.astype(jnp.bfloat16),
        wx=wx.astype(jnp.bfloat16),
        bg=bg,
        wy=wy.astype(jnp.bfloat16),
        by=by,
        dims=dict(H=h_dim, X=inp_x_dim, OUT=out_x_dim, HP=HP, XP=XP, OUTP=OUTP),
    )
    return packed, raw


# ---------------------------------------------------------------------------
# Pure-JAX f32 references mirroring the PyTorch forward exactly.
# ---------------------------------------------------------------------------
def lstm_cell_reference(ht_1, ct_1, xt, raw):
    def lin(p, x):
        w, b = p
        return x @ w.T + b

    ft = jax.nn.sigmoid(lin(raw["wf"], ht_1) + lin(raw["uf"], xt))
    it = jax.nn.sigmoid(lin(raw["wi"], ht_1) + lin(raw["ui"], xt))
    ot = jax.nn.sigmoid(lin(raw["wo"], ht_1) + lin(raw["uo"], xt))
    ct_ = jnp.tanh(lin(raw["wc"], ht_1) + lin(raw["uc"], xt))
    ct = ft * ct_1 + it * ct_
    ht = ot * jnp.tanh(ct)
    yt = lin(raw["xh"], ht)
    return ht, ct, yt


def lstm_sequence_reference(h0, c0, x_seq, raw):
    def step(carry, xt):
        h, c = carry
        h, c, y = lstm_cell_reference(h, c, xt, raw)
        return (h, c), y

    (hT, cT), ys = jax.lax.scan(step, (h0, c0), x_seq)
    return hT, cT, ys


if __name__ == "__main__":
    B, H, X, OUT, T = 2, 32, 16, 24, 8

    key = jax.random.PRNGKey(0)
    k_h, k_c, k_x, k_xs, k_p = jax.random.split(key, 5)

    ht_1 = jax.random.normal(k_h, (B, H), jnp.float32)
    ct_1 = jax.random.normal(k_c, (B, H), jnp.float32)
    xt = jax.random.normal(k_x, (B, X), jnp.float32)
    x_seq = jax.random.normal(k_xs, (T, B, X), jnp.float32)

    packed, raw = init_params(k_p, H, X, OUT)

    # Single-step (the module's forward semantics).
    ht, ct, yt = lstm_cell_pallas(ht_1, ct_1, xt, packed)
    # Full sequence in one pallas_call (weights VMEM-resident, h/c carried).
    hT, cT, y_all = lstm_sequence_pallas(ht_1, ct_1, x_seq, packed)
    jax.block_until_ready((ht, ct, yt, hT, cT, y_all))

    ht_r, ct_r, yt_r = lstm_cell_reference(ht_1, ct_1, xt, raw)
    hT_r, cT_r, y_all_r = lstm_sequence_reference(ht_1, ct_1, x_seq, raw)

    assert ht.shape == (B, H) and ct.shape == (B, H) and yt.shape == (B, OUT)
    assert hT.shape == (B, H) and cT.shape == (B, H) and y_all.shape == (T, B, OUT)

    # bf16 MXU weight operands (f32 accumulate, f32 state) => loose tolerance.
    for got, want in ((ht, ht_r), (ct, ct_r), (yt, yt_r),
                      (hT, hT_r), (cT, cT_r), (y_all, y_all_r)):
        assert jnp.allclose(got, want, rtol=5e-2, atol=5e-2)

    print("KERNEL_OK")
</pallas_src>

<mosaic_0001>
module attributes {stable_mosaic.version = 11 : i64} {
  func.func @_lstm_seq_kernel(%arg0: i32, %arg1: memref<8x128xf32, #tpu.memory_space<vmem>>, %arg2: memref<8x128xf32, #tpu.memory_space<vmem>>, %arg3: memref<1x8x128xf32, #tpu.memory_space<vmem>>, %arg4: memref<128x512xbf16, #tpu.memory_space<vmem>>, %arg5: memref<128x512xbf16, #tpu.memory_space<vmem>>, %arg6: memref<1x512xf32, #tpu.memory_space<vmem>>, %arg7: memref<128x128xbf16, #tpu.memory_space<vmem>>, %arg8: memref<1x128xf32, #tpu.memory_space<vmem>>, %arg9: memref<8x128xf32, #tpu.memory_space<vmem>>, %arg10: memref<8x128xf32, #tpu.memory_space<vmem>>, %arg11: memref<1x8x128xf32, #tpu.memory_space<vmem>>) attributes {dimension_semantics = [#tpu.dimension_semantics<arbitrary>], iteration_bounds = array<i64: 1>, scalar_prefetch = 0 : i64, scratch_operands = 0 : i64, tpu.core_type = #tpu.core_type<tc>, window_params = [{pipeline_mode = #tpu.pipeline_mode<synchronous>, transform_indices = @transform_0, window_bounds = array<i64: 8, 128>}, {pipeline_mode = #tpu.pipeline_mode<synchronous>, transform_indices = @transform_1, window_bounds = array<i64: 8, 128>}, {transform_indices = @transform_2, window_bounds = array<i64: 1, 8, 128>}, {pipeline_mode = #tpu.pipeline_mode<synchronous>, transform_indices = @transform_3, window_bounds = array<i64: 128, 512>}, {pipeline_mode = #tpu.pipeline_mode<synchronous>, transform_indices = @transform_4, window_bounds = array<i64: 128, 512>}, {pipeline_mode = #tpu.pipeline_mode<synchronous>, transform_indices = @transform_5, window_bounds = array<i64: 1, 512>}, {pipeline_mode = #tpu.pipeline_mode<synchronous>, transform_indices = @transform_6, window_bounds = array<i64: 128, 128>}, {pipeline_mode = #tpu.pipeline_mode<synchronous>, transform_indices = @transform_7, window_bounds = array<i64: 1, 128>}, {pipeline_mode = #tpu.pipeline_mode<synchronous>, transform_indices = @transform_8, window_bounds = array<i64: 8, 128>}, {pipeline_mode = #tpu.pipeline_mode<synchronous>, transform_indices = @transform_9, window_bounds = array<i64: 8, 128>}, {transform_indices = @transform_10, window_bounds = array<i64: 1, 8, 128>}]} {
    %c0_i32 = arith.constant 0 : i32
    %0 = arith.cmpi eq, %arg0, %c0_i32 : i32
    %1 = arith.extui %0 : i1 to i32
    %c0_i32_0 = arith.constant 0 : i32
    %2 = arith.cmpi ne, %1, %c0_i32_0 : i32
    scf.if %2 {
      %c0_29 = arith.constant 0 : index
      %c0_30 = arith.constant 0 : index
      %53 = vector.load %arg1[%c0_29, %c0_30] : memref<8x128xf32, #tpu.memory_space<vmem>>, vector<8x128xf32>
      %c0_31 = arith.constant 0 : index
      %c0_32 = arith.constant 0 : index
      %54 = vector.load %arg9[%c0_31, %c0_32] : memref<8x128xf32, #tpu.memory_space<vmem>>, vector<8x128xf32>
      tpu.vector_store %arg9[%c0_31, %c0_32], %53 {strides = array<i32>} : memref<8x128xf32, #tpu.memory_space<vmem>>, vector<8x128xf32>,
      %c0_33 = arith.constant 0 : index
      %c0_34 = arith.constant 0 : index
      %55 = vector.load %arg2[%c0_33, %c0_34] : memref<8x128xf32, #tpu.memory_space<vmem>>, vector<8x128xf32>
      %c0_35 = arith.constant 0 : index
      %c0_36 = arith.constant 0 : index
      %56 = vector.load %arg10[%c0_35, %c0_36] : memref<8x128xf32, #tpu.memory_space<vmem>>, vector<8x128xf32>
      tpu.vector_store %arg10[%c0_35, %c0_36], %55 {strides = array<i32>} : memref<8x128xf32, #tpu.memory_space<vmem>>, vector<8x128xf32>,
    } else {
    }
    %c0 = arith.constant 0 : index
    %c0_1 = arith.constant 0 : index
    %3 = vector.load %arg9[%c0, %c0_1] : memref<8x128xf32, #tpu.memory_space<vmem>>, vector<8x128xf32>
    %4 = arith.truncf %3 : vector<8x128xf32> to vector<8x128xbf16>
    %c0_2 = arith.constant 0 : index
    %c0_3 = arith.constant 0 : index
    %5 = vector.load %arg4[%c0_2, %c0_3] : memref<128x512xbf16, #tpu.memory_space<vmem>>, vector<128x512xbf16>
    %cst = arith.constant dense<0.000000e+00> : vector<8x512xf32>
    %6 = tpu.matmul %4, %5, %cst {dimension_numbers = #tpu.dot_dimension_numbers<[1], [0], [0], [1], [0, 0, 1, 1], [], []>} : vector<8x128xbf16>, vector<128x512xbf16>, vector<8x512xf32> -> vector<8x512xf32>
    %c0_4 = arith.constant 0 : index
    %c0_5 = arith.constant 0 : index
    %c0_6 = arith.constant 0 : index
    %7 = vector.load %arg3[%c0_4, %c0_5, %c0_6] : memref<1x8x128xf32, #tpu.memory_space<vmem>>, vector<1x8x128xf32>
    %8 = vector.shape_cast %7 : vector<1x8x128xf32> to vector<8x128xf32>
    %9 = arith.truncf %8 : vector<8x128xf32> to vector<8x128xbf16>
    %c0_7 = arith.constant 0 : index
    %c0_8 = arith.constant 0 : index
    %10 = vector.load %arg5[%c0_7, %c0_8] : memref<128x512xbf16, #tpu.memory_space<vmem>>, vector<128x512xbf16>
    %cst_9 = arith.constant dense<0.000000e+00> : vector<8x512xf32>
    %11 = tpu.matmul %9, %10, %cst_9 {dimension_numbers = #tpu.dot_dimension_numbers<[1], [0], [0], [1], [0, 0, 1, 1], [], []>} : vector<8x128xbf16>, vector<128x512xbf16>, vector<8x512xf32> -> vector<8x512xf32>
    %12 = arith.addf %6, %11 : vector<8x512xf32>
    %c0_10 = arith.constant 0 : index
    %c0_11 = arith.constant 0 : index
    %13 = vector.load %arg6[%c0_10, %c0_11] : memref<1x512xf32, #tpu.memory_space<vmem>>, vector<1x512xf32>
    %14 = vector.broadcast %13 : vector<1x512xf32> to vector<8x512xf32>
    %15 = arith.addf %12, %14 : vector<8x512xf32>
    %16 = vector.extract_strided_slice %15 {offsets = [0, 0], sizes = [8, 128], strides = [1, 1]} : vector<8x512xf32> to vector<8x128xf32>
    %17 = arith.negf %16 : vector<8x128xf32>
    %18 = math.exp %17 : vector<8x128xf32>
    %cst_12 = arith.constant 1.000000e+00 : f32
    %19 = vector.broadcast %cst_12 : f32 to vector<8x128xf32>
    %20 = arith.addf %19, %18 : vector<8x128xf32>
    %21 = arith.divf %19, %20 : vector<8x128xf32>
    %22 = vector.extract_strided_slice %15 {offsets = [0, 128], sizes = [8, 128], strides = [1, 1]} : vector<8x512xf32> to vector<8x128xf32>
    %23 = arith.negf %22 : vector<8x128xf32>
    %24 = math.exp %23 : vector<8x128xf32>
    %cst_13 = arith.constant 1.000000e+00 : f32
    %25 = vector.broadcast %cst_13 : f32 to vector<8x128xf32>
    %26 = arith.addf %25, %24 : vector<8x128xf32>
    %27 = arith.divf %25, %26 : vector<8x128xf32>
    %28 = vector.extract_strided_slice %15 {offsets = [0, 256], sizes = [8, 128], strides = [1, 1]} : vector<8x512xf32> to vector<8x128xf32>
    %29 = arith.negf %28 : vector<8x128xf32>
    %30 = math.exp %29 : vector<8x128xf32>
    %cst_14 = arith.constant 1.000000e+00 : f32
    %31 = vector.broadcast %cst_14 : f32 to vector<8x128xf32>
    %32 = arith.addf %31, %30 : vector<8x128xf32>
    %33 = arith.divf %31, %32 : vector<8x128xf32>
    %34 = vector.extract_strided_slice %15 {offsets = [0, 384], sizes = [8, 128], strides = [1, 1]} : vector<8x512xf32> to vector<8x128xf32>
    %35 = math.tanh %34 : vector<8x128xf32>
    %c0_15 = arith.constant 0 : index
    %c0_16 = arith.constant 0 : index
    %36 = vector.load %arg10[%c0_15, %c0_16] : memref<8x128xf32, #tpu.memory_space<vmem>>, vector<8x128xf32>
    %37 = arith.mulf %21, %36 : vector<8x128xf32>
    %38 = arith.mulf %27, %35 : vector<8x128xf32>
    %39 = arith.addf %37, %38 : vector<8x128xf32>
    %40 = math.tanh %39 : vector<8x128xf32>
    %41 = arith.mulf %33, %40 : vector<8x128xf32>
    %42 = arith.truncf %41 : vector<8x128xf32> to vector<8x128xbf16>
    %c0_17 = arith.constant 0 : index
    %c0_18 = arith.constant 0 : index
    %43 = vector.load %arg7[%c0_17, %c0_18] : memref<128x128xbf16, #tpu.memory_space<vmem>>, vector<128x128xbf16>
    %cst_19 = arith.constant dense<0.000000e+00> : vector<8x128xf32>
    %44 = tpu.matmul %42, %43, %cst_19 {dimension_numbers = #tpu.dot_dimension_numbers<[1], [0], [0], [1], [0, 0, 1, 1], [], []>} : vector<8x128xbf16>, vector<128x128xbf16>, vector<8x128xf32> -> vector<8x128xf32>
    %c0_20 = arith.constant 0 : index
    %c0_21 = arith.constant 0 : index
    %45 = vector.load %arg8[%c0_20, %c0_21] : memref<1x128xf32, #tpu.memory_space<vmem>>, vector<1x128xf32>
    %46 = vector.broadcast %45 : vector<1x128xf32> to vector<8x128xf32>
    %47 = arith.addf %44, %46 : vector<8x128xf32>
    %c0_22 = arith.constant 0 : index
    %c0_23 = arith.constant 0 : index
    %48 = vector.load %arg9[%c0_22, %c0_23] : memref<8x128xf32, #tpu.memory_space<vmem>>, vector<8x128xf32>
    tpu.vector_store %arg9[%c0_22, %c0_23], %41 {strides = array<i32>} : memref<8x128xf32, #tpu.memory_space<vmem>>, vector<8x128xf32>,
    %c0_24 = arith.constant 0 : index
    %c0_25 = arith.constant 0 : index
    %49 = vector.load %arg10[%c0_24, %c0_25] : memref<8x128xf32, #tpu.memory_space<vmem>>, vector<8x128xf32>
    tpu.vector_store %arg10[%c0_24, %c0_25], %39 {strides = array<i32>} : memref<8x128xf32, #tpu.memory_space<vmem>>, vector<8x128xf32>,
    %c0_26 = arith.constant 0 : index
    %c0_27 = arith.constant 0 : index
    %c0_28 = arith.constant 0 : index
    %50 = vector.load %arg11[%c0_26, %c0_27, %c0_28] : memref<1x8x128xf32, #tpu.memory_space<vmem>>, vector<1x8x128xf32>
    %51 = vector.shape_cast %50 : vector<1x8x128xf32> to vector<8x128xf32>
    %52 = vector.shape_cast %47 : vector<8x128xf32> to vector<1x8x128xf32>
    tpu.vector_store %arg11[%c0_26, %c0_27, %c0_28], %52 {strides = array<i32>} : memref<1x8x128xf32, #tpu.memory_space<vmem>>, vector<1x8x128xf32>,
    return
  }
  func.func @transform_0(%arg0: i32) -> (i32, i32) {
    %c0_i32 = arith.constant 0 : i32
    %c0_i32_0 = arith.constant 0 : i32
    %c0_i32_1 = arith.constant 0 : i32
    return %c0_i32, %c0_i32_0 : i32, i32
  }
  func.func @transform_1(%arg0: i32) -> (i32, i32) {
    %c0_i32 = arith.constant 0 : i32
    %c0_i32_0 = arith.constant 0 : i32
    %c0_i32_1 = arith.constant 0 : i32
    return %c0_i32, %c0_i32_0 : i32, i32
  }
  func.func @transform_2(%arg0: i32) -> (i32, i32, i32) {
    %c0_i32 = arith.constant 0 : i32
    %c0_i32_0 = arith.constant 0 : i32
    %c0_i32_1 = arith.constant 0 : i32
    return %arg0, %c0_i32, %c0_i32_0 : i32, i32, i32
  }
  func.func @transform_3(%arg0: i32) -> (i32, i32) {
    %c0_i32 = arith.constant 0 : i32
    %c0_i32_0 = arith.constant 0 : i32
    %c0_i32_1 = arith.constant 0 : i32
    return %c0_i32, %c0_i32_0 : i32, i32
  }
  func.func @transform_4(%arg0: i32) -> (i32, i32) {
    %c0_i32 = arith.constant 0 : i32
    %c0_i32_0 = arith.constant 0 : i32
    %c0_i32_1 = arith.constant 0 : i32
    return %c0_i32, %c0_i32_0 : i32, i32
  }
  func.func @transform_5(%arg0: i32) -> (i32, i32) {
    %c0_i32 = arith.constant 0 : i32
    %c0_i32_0 = arith.constant 0 : i32
    %c0_i32_1 = arith.constant 0 : i32
    return %c0_i32, %c0_i32_0 : i32, i32
  }
  func.func @transform_6(%arg0: i32) -> (i32, i32) {
    %c0_i32 = arith.constant 0 : i32
    %c0_i32_0 = arith.constant 0 : i32
    %c0_i32_1 = arith.constant 0 : i32
    return %c0_i32, %c0_i32_0 : i32, i32
  }
  func.func @transform_7(%arg0: i32) -> (i32, i32) {
    %c0_i32 = arith.constant 0 : i32
    %c0_i32_0 = arith.constant 0 : i32
    %c0_i32_1 = arith.constant 0 : i32
    return %c0_i32, %c0_i32_0 : i32, i32
  }
  func.func @transform_8(%arg0: i32) -> (i32, i32) {
    %c0_i32 = arith.constant 0 : i32
    %c0_i32_0 = arith.constant 0 : i32
    %c0_i32_1 = arith.constant 0 : i32
    return %c0_i32, %c0_i32_0 : i32, i32
  }
  func.func @transform_9(%arg0: i32) -> (i32, i32) {
    %c0_i32 = arith.constant 0 : i32
    %c0_i32_0 = arith.constant 0 : i32
    %c0_i32_1 = arith.constant 0 : i32
    return %c0_i32, %c0_i32_0 : i32, i32
  }
  func.func @transform_10(%arg0: i32) -> (i32, i32, i32) {
    %c0_i32 = arith.constant 0 : i32
    %c0_i32_0 = arith.constant 0 : i32
    %c0_i32_1 = arith.constant 0 : i32
    return %arg0, %c0_i32, %c0_i32_0 : i32, i32, i32
  }
}

</mosaic_0001>

<bundles_post_ra>
// kernel: tpu_custom_call.1
= control target key start
LH: loop header
LB: loop body
LE: loop exit
PB: predicated region body
PF: predicated region fallthrough
CT: control target
= control target key end

     0   :  { %16 = vsyncpa [#allocation3], 0  ;;  %s1634_s0 = inlined_call_operand.hbm [shape: f32[8,128], index: 0, kind: input, shape index: {}]   ;;  %s1635_s1 = inlined_call_operand.hbm [shape: f32[8,128], index: 1, kind: input, shape index: {}]   ;;  %s1636_s2 = inlined_call_operand.hbm [shape: f32[1,8,128], index: 2, kind: input, shape index: {}]   ;;  %s1637_s3 = inlined_call_operand.hbm [shape: bf16[128,512], index: 3, kind: input, shape index: {}]   ;;  %s1638_s4 = inlined_call_operand.hbm [shape: bf16[128,512], index: 4, kind: input, shape index: {}]   ;;  %s1639_s5 = inlined_call_operand.hbm [shape: f32[1,512], index: 5, kind: input, shape index: {}]   ;;  %s1640_s6 = inlined_call_operand.hbm [shape: bf16[128,128], index: 6, kind: input, shape index: {}]   ;;  %s1641_s7 = inlined_call_operand.hbm [shape: f32[1,128], index: 7, kind: input, shape index: {}]   ;;  %s1642_s8 = inlined_call_operand.hbm [shape: f32[8,128], index: 8, kind: output, shape index: {0}]   ;;  %s1643_s9 = inlined_call_operand.hbm [shape: f32[8,128], index: 9, kind: output, shape index: {1}]   ;;  %s1644_s10 = inlined_call_operand.hbm [shape: f32[1,8,128], index: 10, kind: output, shape index: {2}]  }
   0x1   :  { %17 = vsyncpa [#allocation6], 0 }
   0x2   :  { %18 = vsyncpa [#allocation9], 0 }
   0x3   :  { %19 = vsyncpa [#allocation12], 0 }
   0x4   :  { %20 = vsyncpa [#allocation15], 0 }
   0x5   :  { %21 = vsyncpa [#allocation4], 0 }
   0x6   :  { %22 = vsyncpa [#allocation18], 0  ;;  %s1405_s13 = smov [#allocation5]   ;;  %s1406_s15 = smov [#allocation8]  }
   0x7   :  { %s39_s14 = sshll.u32 %s1405_s13, 4  ;;  %s58_s16 = sshll.u32 %s1406_s15, 4  ;;  %s40_s14 = int_to_ptr.vmem [resolvable:$true] %s39_s14  ;;  %s1478_s16 = int_to_ptr.vmem [resolvable:$true] %s58_s16 }
   0x8   :  { %s1149_s19 = scalar_lea.hbm %s1635_s1, 128 }
   0x9   :  { %p1150_p0 = scmp.ne.s32.totalorder %s1635_s1, %s1149_s19  ;;  %p1153_p1 = scmp.lt.u32.totalorder %s1149_s19, %s1635_s1 }
   0xb   :  { %p1155_p2 = pnand %p1153_p1, %p1150_p0 }
   0xd   :  { %1158 = shalt.err (!%p1155_p2)
}
   0xe   :  { %s1159_s24 = scalar_lea.vmem %s40_s14, 128  ;;  %p1164_p4 = scmp.lt.s32.totalorder %s40_s14, %s40_s14 }
   0xf   :  { %p1160_p3 = scmp.ne.s32.totalorder %s40_s14, %s1159_s24  ;;  %p1165_p5 = scmp.lt.s32.totalorder %s1159_s24, %s1159_s24 }
  0x11   :  { %p1166_p6 = por %p1165_p5, %p1164_p4 }
  0x13   :  { %p1167_p7 = pnand %p1166_p6, %p1160_p3 }
  0x15   :  { %1170 = shalt.err (!%p1167_p7)
}
  0x16   :  { %42 = dma.hbm_to_vmem [thread:$0]  %s1635_s1, 128, %s40_s14, [#allocation6]  }
  0x17   :  { %s1171_s29 = scalar_lea.hbm %s1637_s3, 4096 }
  0x18   :  { %p1172_p8 = scmp.ne.s32.totalorder %s1637_s3, %s1171_s29  ;;  %p1175_p9 = scmp.lt.u32.totalorder %s1171_s29, %s1637_s3 }
  0x1a   :  { %p1177_p10 = pnand %p1175_p9, %p1172_p8 }
  0x1c   :  { %1180 = shalt.err (!%p1177_p10)
}
  0x1d   :  { %s1181_s15 = scalar_lea.vmem %s1478_s16, 4096  ;;  %p1186_p12 = scmp.lt.s32.totalorder %s1478_s16, %s1478_s16 }
  0x1e   :  { %p1182_p11 = scmp.ne.s32.totalorder %s1478_s16, %s1181_s15  ;;  %p1187_p13 = scmp.lt.s32.totalorder %s1181_s15, %s1181_s15 }
  0x20   :  { %p1188_p0 = por %p1187_p13, %p1186_p12 }
  0x22   :  { %p1189_p1 = pnand %p1188_p0, %p1182_p11 }
  0x24   :  { %1192 = shalt.err (!%p1189_p1)
}
  0x25   :  { %s1407_s1 = smov 256   ;;  %s1408_s14 = smov 16  }
  0x26   :  { %64 = dma.hbm_to_vmem [thread:$0]  %s1637_s3, 4096, %s1478_s16, [#allocation9], %s1407_s1, %s1407_s1, %s1408_s14  }
  0x27   :  { %s1409_s19 = smov [#allocation11]   ;;  %s1410_s21 = smov [#allocation2]  }
  0x28   :  { %s83_s20 = sshll.u32 %s1409_s19, 4  ;;  %s29_s22 = sshll.u32 %s1410_s21, 4  ;;  %s84_s20 = int_to_ptr.vmem [resolvable:$true] %s83_s20  ;;  %s30_s22 = int_to_ptr.vmem [resolvable:$true] %s29_s22 }
  0x29   :  { %s1193_s25 = scalar_lea.hbm %s1639_s5, 64 }
  0x2a   :  { %p1194_p2 = scmp.ne.s32.totalorder %s1639_s5, %s1193_s25  ;;  %p1197_p3 = scmp.lt.u32.totalorder %s1193_s25, %s1639_s5 }
  0x2c   :  { %p1199_p4 = pnand %p1197_p3, %p1194_p2 }
  0x2e   :  { %1202 = shalt.err (!%p1199_p4)
}
  0x2f   :  { %s1203_s3 = scalar_lea.vmem %s84_s20, 64  ;;  %p1208_p6 = scmp.lt.s32.totalorder %s84_s20, %s84_s20 }
  0x30   :  { %p1204_p5 = scmp.ne.s32.totalorder %s84_s20, %s1203_s3  ;;  %p1209_p7 = scmp.lt.s32.totalorder %s1203_s3, %s1203_s3 }
  0x32   :  { %p1210_p8 = por %p1209_p7, %p1208_p6 }
  0x34   :  { %p1211_p9 = pnand %p1210_p8, %p1204_p5 }
  0x36   :  { %1214 = shalt.err (!%p1211_p9)
}
  0x37   :  { %86 = dma.hbm_to_vmem [thread:$0]  %s1639_s5, 64, %s84_s20, [#allocation12]  }
  0x38   :  { %s1215_s13 = scalar_lea.hbm %s1634_s0, 128 }
  0x39   :  { %p1216_p10 = scmp.ne.s32.totalorder %s1634_s0, %s1215_s13  ;;  %p1219_p11 = scmp.lt.u32.totalorder %s1215_s13, %s1634_s0 }
  0x3b   :  { %p1221_p12 = pnand %p1219_p11, %p1216_p10 }
  0x3d   :  { %1224 = shalt.err (!%p1221_p12)
}
  0x3e   :  { %s1225_s21 = scalar_lea.vmem %s30_s22, 128  ;;  %p1230_p0 = scmp.lt.s32.totalorder %s30_s22, %s30_s22 }
  0x3f   :  { %p1226_p13 = scmp.ne.s32.totalorder %s30_s22, %s1225_s21  ;;  %p1231_p1 = scmp.lt.s32.totalorder %s1225_s21, %s1225_s21 }
  0x41   :  { %p1232_p2 = por %p1231_p1, %p1230_p0 }
  0x43   :  { %p1233_p3 = pnand %p1232_p2, %p1226_p13 }
  0x45   :  { %1236 = shalt.err (!%p1233_p3)
}
  0x46   :  { %32 = dma.hbm_to_vmem [thread:$0]  %s1634_s0, 128, %s30_s22, [#allocation3]  }
  0x47   :  { %s1411_s23 = smov [#allocation7]   ;;  %s1412_s25 = smov [#allocation10]  }
  0x48   :  { %s49_s24 = sshll.u32 %s1411_s23, 4  ;;  %s70_s26 = sshll.u32 %s1412_s25, 4  ;;  %s50_s24 = int_to_ptr.vmem [resolvable:$true] %s49_s24  ;;  %s1536_s26 = int_to_ptr.vmem [resolvable:$true] %s70_s26 }
  0x49   :  { %s1237_s29 = scalar_lea.hbm %s1636_s2, 128 }
  0x4a   :  { %p1238_p4 = scmp.ne.s32.totalorder %s1636_s2, %s1237_s29  ;;  %p1241_p5 = scmp.lt.u32.totalorder %s1237_s29, %s1636_s2 }
  0x4c   :  { %p1243_p6 = pnand %p1241_p5, %p1238_p4 }
  0x4e   :  { %1246 = shalt.err (!%p1243_p6)
}
  0x4f   :  { %s1247_s0 = scalar_lea.vmem %s50_s24, 128  ;;  %p1252_p8 = scmp.lt.s32.totalorder %s50_s24, %s50_s24 }
  0x50   :  { %p1248_p7 = scmp.ne.s32.totalorder %s50_s24, %s1247_s0  ;;  %p1253_p9 = scmp.lt.s32.totalorder %s1247_s0, %s1247_s0 }
  0x52   :  { %p1254_p10 = por %p1253_p9, %p1252_p8 }
  0x54   :  { %p1255_p11 = pnand %p1254_p10, %p1248_p7 }
  0x56   :  { %1258 = shalt.err (!%p1255_p11)
}
  0x57   :  { %52 = dma.hbm_to_vmem [thread:$0]  %s1636_s2, 128, %s50_s24, [#allocation6]  }
  0x58   :  { %s1259_s17 = scalar_lea.hbm %s1638_s4, 4096 }
  0x59   :  { %p1260_p12 = scmp.ne.s32.totalorder %s1638_s4, %s1259_s17  ;;  %p1263_p13 = scmp.lt.u32.totalorder %s1259_s17, %s1638_s4 }
  0x5b   :  { %p1265_p0 = pnand %p1263_p13, %p1260_p12 }
  0x5d   :  { %1268 = shalt.err (!%p1265_p0)
}
  0x5e   :  { %s1269_s20 = scalar_lea.vmem %s1536_s26, 4096  ;;  %p1274_p2 = scmp.lt.s32.totalorder %s1536_s26, %s1536_s26 }
  0x5f   :  { %p1270_p1 = scmp.ne.s32.totalorder %s1536_s26, %s1269_s20  ;;  %p1275_p3 = scmp.lt.s32.totalorder %s1269_s20, %s1269_s20 }
  0x61   :  { %p1276_p4 = por %p1275_p3, %p1274_p2 }
  0x63   :  { %p1277_p5 = pnand %p1276_p4, %p1270_p1 }
  0x65   :  { %1280 = shalt.err (!%p1277_p5)
}
  0x66   :  { %76 = dma.hbm_to_vmem [thread:$0]  %s1638_s4, 4096, %s1536_s26, [#allocation9], %s1407_s1, %s1407_s1, %s1408_s14  }
  0x67   :  { %s1413_s24 = smov [#allocation13]   ;;  %s1281_s29 = scalar_lea.hbm %s1640_s6, 1024 }
  0x68   :  { %s92_s25 = sshll.u32 %s1413_s24, 4  ;;  %p1282_p6 = scmp.ne.s32.totalorder %s1640_s6, %s1281_s29  ;;  %s93_s25 = int_to_ptr.vmem [resolvable:$true] %s92_s25 }
  0x69   :  { %p1285_p7 = scmp.lt.u32.totalorder %s1281_s29, %s1640_s6 }
  0x6b   :  { %p1287_p8 = pnand %p1285_p7, %p1282_p6 }
  0x6d   :  { %1290 = shalt.err (!%p1287_p8)
}
  0x6e   :  { %s1291_s0 = scalar_lea.vmem %s93_s25, 1024  ;;  %p1296_p10 = scmp.lt.s32.totalorder %s93_s25, %s93_s25 }
  0x6f   :  { %p1292_p9 = scmp.ne.s32.totalorder %s93_s25, %s1291_s0  ;;  %p1297_p11 = scmp.lt.s32.totalorder %s1291_s0, %s1291_s0 }
  0x71   :  { %p1298_p12 = por %p1297_p11, %p1296_p10 }
  0x73   :  { %p1299_p13 = pnand %p1298_p12, %p1292_p9 }
  0x75   :  { %1302 = shalt.err (!%p1299_p13)
}
  0x76   :  { %s1414_s4 = smov 64   ;;  %s1415_s1 = smov 4  }
  0x77   :  { %98 = dma.hbm_to_vmem [thread:$0]  %s1640_s6, 1024, %s93_s25, [#allocation12], %s1414_s4, %s1414_s4, %s1415_s1  }
  0x78   :  { %s1416_s22 = smov [#allocation14]   ;;  %s1303_s17 = scalar_lea.hbm %s1641_s7, 16 }
  0x79   :  { %s105_s12 = sshll.u32 %s1416_s22, 4  ;;  %p1304_p0 = scmp.ne.s32.totalorder %s1641_s7, %s1303_s17  ;;  %s106_s12 = int_to_ptr.vmem [resolvable:$true] %s105_s12 }
  0x7a   :  { %p1307_p1 = scmp.lt.u32.totalorder %s1303_s17, %s1641_s7 }
  0x7c   :  { %p1309_p2 = pnand %p1307_p1, %p1304_p0 }
  0x7e   :  { %1312 = shalt.err (!%p1309_p2)
}
  0x7f   :  { %s1313_s20 = scalar_lea.vmem %s106_s12, 16  ;;  %s1317_s6 = scalar_lea.vmem %s106_s12, 32 }
  0x80   :  { %p1314_p3 = scmp.ne.s32.totalorder %s106_s12, %s1313_s20  ;;  %p1318_p4 = scmp.lt.s32.totalorder %s106_s12, %s106_s12 }
  0x81   :  { %p1319_p5 = scmp.lt.s32.totalorder %s1317_s6, %s1313_s20 }
  0x83   :  { %p1320_p6 = por %p1319_p5, %p1318_p4 }
  0x85   :  { %p1321_p7 = pnand %p1320_p6, %p1314_p3 }
  0x87   :  { %1324 = shalt.err (!%p1321_p7)
}
  0x88   :  { %108 = dma.hbm_to_vmem [thread:$0]  %s1641_s7, 16, %s106_s12, [#allocation15]  }
  0x89   :  { %1391 = dma.done.wait [#allocation3], 128  }
  0x8a   :  { %1392 = vsyncadd [#allocation3], 4294967168 }
  0x8b   :  { %1393 = dma.done.wait [#allocation6], 256  }
  0x8c   :  { %1394 = vsyncadd [#allocation6], 4294967040 }
  0x8d   :  { %1395 = dma.done.wait [#allocation9], 8192  }
  0x8e   :  { %1396 = vsyncadd [#allocation9], 4294959104 }
  0x8f   :  { %1397 = dma.done.wait [#allocation12], 1088  }
  0x90   :  { %1398 = vsyncadd [#allocation12], 4294966208 }
  0x91   :  { %1399 = dma.done.wait [#allocation15], 16  }
  0x92   :  { %1400 = vsyncadd [#allocation15], 4294967280  ;;  %v1417_v0 = vmov 0   ;;  %v1029_v1 = vld [vmem:[#allocation10 + $0x4] ss:$16 sps:$4 sm:$0xff]   ;;  %v176_v33 = vld [vmem:[#allocation7] sm:$0xff] }
  0x93   :  { %402 = vmatprep.mubr.bf16.mxu0 %v1417_v0  ;;  %443 = vmatprep.mubr.bf16.mxu1 %v1417_v0  ;;  %v1031_v2 = vld [vmem:[#allocation10 + $0xc] ss:$16 sps:$4 sm:$0xff]   ;;  %v1033_v3 = vld [vmem:[#allocation10] ss:$16 sps:$4 sm:$0xff]   ;;  %v1034_v4 = vld [vmem:[#allocation10 + $0x8] ss:$16 sps:$4 sm:$0xff]   ;;  %v177_v36 = vpack.c.bf16 %v176_v33, %v176_v33 }
  0x94   :  { %370 = vmatprep.subr.bf16.mxu0 %v1029_v1  ;;  %411 = vmatprep.subr.bf16.mxu1 %v1031_v2  ;;  %v1035_v5 = vld [vmem:[#allocation10 + $0x24] ss:$16 sps:$4 sm:$0xff]   ;;  %v1037_v6 = vld [vmem:[#allocation10 + $0x2c] ss:$16 sps:$4 sm:$0xff]   ;;  %v1039_v7 = vld [vmem:[#allocation10 + $0x20] ss:$16 sps:$4 sm:$0xff]  }
  0x95   :  { %371 = vmatpush1.bf16.msra.mxu0 %v1033_v3  ;;  %412 = vmatpush1.bf16.msra.mxu1 %v1034_v4  ;;  %v1040_v8 = vld [vmem:[#allocation10 + $0x28] ss:$16 sps:$4 sm:$0xff]   ;;  %v1041_v9 = vld [vmem:[#allocation10 + $0x44] ss:$16 sps:$4 sm:$0xff]   ;;  %v1043_v10 = vld [vmem:[#allocation10 + $0x4c] ss:$16 sps:$4 sm:$0xff]  }
  0x96   :  { %372 = vmatprep.subr.bf16.mxu0 %v1035_v5  ;;  %413 = vmatprep.subr.bf16.mxu1 %v1037_v6  ;;  %v1045_v11 = vld [vmem:[#allocation10 + $0x40] ss:$16 sps:$4 sm:$0xff]   ;;  %v1046_v12 = vld [vmem:[#allocation10 + $0x48] ss:$16 sps:$4 sm:$0xff]   ;;  %v1047_v13 = vld [vmem:[#allocation10 + $0x64] ss:$16 sps:$4 sm:$0xff]  }
  0x97   :  { %v1049_v14 = vld [vmem:[#allocation10 + $0x6c] ss:$16 sps:$4 sm:$0xff]   ;;  %v1051_v15 = vld [vmem:[#allocation10 + $0x60] ss:$16 sps:$4 sm:$0xff]   ;;  %v1052_v16 = vld [vmem:[#allocation10 + $0x68] ss:$16 sps:$4 sm:$0xff]  }
  0x98   :  { %v1053_v17 = vld [vmem:[#allocation10 + $0x84] ss:$16 sps:$4 sm:$0xff]   ;;  %v1055_v18 = vld [vmem:[#allocation10 + $0x8c] ss:$16 sps:$4 sm:$0xff]   ;;  %v1057_v19 = vld [vmem:[#allocation10 + $0x80] ss:$16 sps:$4 sm:$0xff]  }
  0x99   :  { %373 = vmatpush1.bf16.msra.mxu0 %v1039_v7  ;;  %414 = vmatpush1.bf16.msra.mxu1 %v1040_v8  ;;  %v1058_v20 = vld [vmem:[#allocation10 + $0x88] ss:$16 sps:$4 sm:$0xff]   ;;  %v1059_v21 = vld [vmem:[#allocation10 + $0xa4] ss:$16 sps:$4 sm:$0xff]   ;;  %v1061_v22 = vld [vmem:[#allocation10 + $0xac] ss:$16 sps:$4 sm:$0xff]  }
  0x9a   :  { %374 = vmatprep.subr.bf16.mxu0 %v1041_v9  ;;  %415 = vmatprep.subr.bf16.mxu1 %v1043_v10  ;;  %v1063_v23 = vld [vmem:[#allocation10 + $0xa0] ss:$16 sps:$4 sm:$0xff]   ;;  %v1064_v24 = vld [vmem:[#allocation10 + $0xa8] ss:$16 sps:$4 sm:$0xff]   ;;  %v1065_v25 = vld [vmem:[#allocation10 + $0xc4] ss:$16 sps:$4 sm:$0xff]  }
  0x9b   :  { %v1067_v26 = vld [vmem:[#allocation10 + $0xcc] ss:$16 sps:$4 sm:$0xff]   ;;  %v1069_v27 = vld [vmem:[#allocation10 + $0xc0] ss:$16 sps:$4 sm:$0xff]   ;;  %v1070_v28 = vld [vmem:[#allocation10 + $0xc8] ss:$16 sps:$4 sm:$0xff]  }
  0x9c   :  { %v1071_v29 = vld [vmem:[#allocation10 + $0xe4] ss:$16 sps:$4 sm:$0xff]   ;;  %v1073_v30 = vld [vmem:[#allocation10 + $0xec] ss:$16 sps:$4 sm:$0xff]   ;;  %v1075_v31 = vld [vmem:[#allocation10 + $0xe0] ss:$16 sps:$4 sm:$0xff]  }
  0x9d   :  { %375 = vmatpush1.bf16.msra.mxu0 %v1045_v11  ;;  %416 = vmatpush1.bf16.msra.mxu1 %v1046_v12  ;;  %v1076_v32 = vld [vmem:[#allocation10 + $0xe8] ss:$16 sps:$4 sm:$0xff]   ;;  %v1079_v34 = vld [vmem:[#allocation8 + $0x4] ss:$16 sps:$4 sm:$0xff]   ;;  %v1082_v35 = vld [vmem:[#allocation8 + $0xc] ss:$16 sps:$4 sm:$0xff]  }
  0x9e   :  { %376 = vmatprep.subr.bf16.mxu0 %v1047_v13  ;;  %417 = vmatprep.subr.bf16.mxu1 %v1049_v14  ;;  %v1077_v37 = vld [vmem:[#allocation8] ss:$16 sps:$4 sm:$0xff]   ;;  %v1080_v38 = vld [vmem:[#allocation8 + $0x8] ss:$16 sps:$4 sm:$0xff]   ;;  %v1085_v39 = vld [vmem:[#allocation8 + $0x24] ss:$16 sps:$4 sm:$0xff]  }
  0x9f   :  { %v1088_v40 = vld [vmem:[#allocation8 + $0x2c] ss:$16 sps:$4 sm:$0xff]   ;;  %v1083_v41 = vld [vmem:[#allocation8 + $0x20] ss:$16 sps:$4 sm:$0xff]   ;;  %v1086_v42 = vld [vmem:[#allocation8 + $0x28] ss:$16 sps:$4 sm:$0xff]  }
  0xa0   :  { %v1091_v43 = vld [vmem:[#allocation8 + $0x44] ss:$16 sps:$4 sm:$0xff]   ;;  %v1094_v44 = vld [vmem:[#allocation8 + $0x4c] ss:$16 sps:$4 sm:$0xff]   ;;  %v1089_v45 = vld [vmem:[#allocation8 + $0x40] ss:$16 sps:$4 sm:$0xff]  }
  0xa1   :  { %377 = vmatpush1.bf16.msra.mxu0 %v1051_v15  ;;  %418 = vmatpush1.bf16.msra.mxu1 %v1052_v16  ;;  %v1092_v46 = vld [vmem:[#allocation8 + $0x48] ss:$16 sps:$4 sm:$0xff]   ;;  %v1097_v47 = vld [vmem:[#allocation8 + $0x64] ss:$16 sps:$4 sm:$0xff]   ;;  %v1100_v48 = vld [vmem:[#allocation8 + $0x6c] ss:$16 sps:$4 sm:$0xff]  }
  0xa2   :  { %378 = vmatprep.subr.bf16.mxu0 %v1053_v17  ;;  %419 = vmatprep.subr.bf16.mxu1 %v1055_v18  ;;  %v1095_v49 = vld [vmem:[#allocation8 + $0x60] ss:$16 sps:$4 sm:$0xff]   ;;  %v1098_v50 = vld [vmem:[#allocation8 + $0x68] ss:$16 sps:$4 sm:$0xff]   ;;  %v1103_v51 = vld [vmem:[#allocation8 + $0x84] ss:$16 sps:$4 sm:$0xff]  }
  0xa3   :  { %v1106_v52 = vld [vmem:[#allocation8 + $0x8c] ss:$16 sps:$4 sm:$0xff]   ;;  %v1101_v53 = vld [vmem:[#allocation8 + $0x80] ss:$16 sps:$4 sm:$0xff]   ;;  %v1104_v54 = vld [vmem:[#allocation8 + $0x88] ss:$16 sps:$4 sm:$0xff]  }
  0xa4   :  { %v1109_v55 = vld [vmem:[#allocation8 + $0xa4] ss:$16 sps:$4 sm:$0xff]   ;;  %v1112_v56 = vld [vmem:[#allocation8 + $0xac] ss:$16 sps:$4 sm:$0xff]   ;;  %v1107_v57 = vld [vmem:[#allocation8 + $0xa0] ss:$16 sps:$4 sm:$0xff]  }
  0xa5   :  { %379 = vmatpush1.bf16.msra.mxu0 %v1057_v19  ;;  %420 = vmatpush1.bf16.msra.mxu1 %v1058_v20  ;;  %v1110_v58 = vld [vmem:[#allocation8 + $0xa8] ss:$16 sps:$4 sm:$0xff]   ;;  %v1115_v59 = vld [vmem:[#allocation8 + $0xc4] ss:$16 sps:$4 sm:$0xff]   ;;  %v1118_v60 = vld [vmem:[#allocation8 + $0xcc] ss:$16 sps:$4 sm:$0xff]  }
  0xa6   :  { %380 = vmatprep.subr.bf16.mxu0 %v1059_v21  ;;  %421 = vmatprep.subr.bf16.mxu1 %v1061_v22  ;;  %v1113_v61 = vld [vmem:[#allocation8 + $0xc0] ss:$16 sps:$4 sm:$0xff]   ;;  %v1116_v62 = vld [vmem:[#allocation8 + $0xc8] ss:$16 sps:$4 sm:$0xff]   ;;  %v1121_v63 = vld [vmem:[#allocation8 + $0xe4] ss:$16 sps:$4 sm:$0xff]   ;;  %v696_v22 = vlaneseq }
  0xa7   :  { %v1119_v1 = vld [vmem:[#allocation8 + $0xe0] ss:$16 sps:$4 sm:$0xff]   ;;  %v1122_v2 = vld [vmem:[#allocation8 + $0xe8] ss:$16 sps:$4 sm:$0xff]   ;;  %v1418_v6 = vmov 0.0   ;;  %vm1419_vm0 = vmmov 0  }
  0xa8   :  { %v138_v3 = vld [vmem:[#allocation2] sm:$0xff]  ;;  %v1127_v8 = vld [vmem:[#allocation13 + $0x10] sm:$0xff]   ;;  %v1128_v9 = vld [vmem:[#allocation13 + $0x18] sm:$0xff]   ;;  %s1420_s7 = smov [#allocation17]   ;;  %s1421_s25 = smov [#allocation16]  }
  0xa9   :  { %381 = vmatpush1.bf16.msra.mxu0 %v1063_v23  ;;  %422 = vmatpush1.bf16.msra.mxu1 %v1064_v24  ;;  %v143_v4 = vpack.c.bf16 %v138_v3, %v138_v3  ;;  %v1125_v5 = vld [vmem:[#allocation13] sm:$0xff]   ;;  %v1126_v7 = vld [vmem:[#allocation13 + $0x8] sm:$0xff]   ;;  %v1131_v12 = vld [vmem:[#allocation13 + $0x30] sm:$0xff]   ;;  %v697_v23 = vshrl.u32 %v696_v22, 7  ;;  %s876_s24 = sshll.u32 %s1420_s7, 4  ;;  %s866_s27 = sshll.u32 %s1421_s25, 4  ;;  %s877_s24 = int_to_ptr.vmem [resolvable:$true] %s876_s24  ;;  %s867_s27 = int_to_ptr.vmem [resolvable:$true] %s866_s27 }
  0xaa   :  { %382 = vmatprep.subr.bf16.mxu0 %v1065_v25  ;;  %423 = vmatprep.subr.bf16.mxu1 %v1067_v26  ;;  %v1129_v10 = vld [vmem:[#allocation13 + $0x20] sm:$0xff]   ;;  %v1130_v11 = vld [vmem:[#allocation13 + $0x28] sm:$0xff]   ;;  %v1132_v13 = vld [vmem:[#allocation13 + $0x38] sm:$0xff]   ;;  %s1325_s28 = scalar_lea.vmem %s877_s24, 128  ;;  %p1330_p9 = scmp.lt.s32.totalorder %s877_s24, %s877_s24 }
  0xab   :  { %v698_v24 = vsub.s32 0, %v697_v23  ;;  %v694_v25 = vld [vmem:[#allocation11] sm:$0xf]  ;;  %v702_v26 = vsub.s32 1, %v697_v23  ;;  %p1326_p8 = scmp.ne.s32.totalorder %s877_s24, %s1325_s28  ;;  %p1331_p10 = scmp.lt.s32.totalorder %s1325_s28, %s1325_s28 }
  0xad   :  { %383 = vmatpush1.bf16.msra.mxu0 %v1069_v27  ;;  %424 = vmatpush1.bf16.msra.mxu1 %v1070_v28  ;;  %v699_v27 = vrot.slane %v694_v25, %v698_v24  ;;  %p1332_p11 = por %p1331_p10, %p1330_p9 }
  0xae   :  { %384 = vmatprep.subr.bf16.mxu0 %v1071_v29  ;;  %425 = vmatprep.subr.bf16.mxu1 %v1073_v30  ;;  %v703_v30 = vrot.slane %v694_v25, %v702_v26 }
  0xaf   :  { %p1333_p12 = pnand %p1332_p11, %p1326_p8 }
  0xb1   :  { %385 = vmatpush1.bf16.msra.mxu0 %v1075_v31  ;;  %426 = vmatpush1.bf16.msra.mxu1 %v1076_v32 }
  0xb2   :  { %612 = vmatprep.subr.bf16.mxu0 %v1079_v34  ;;  %653 = vmatprep.subr.bf16.mxu1 %v1082_v35 }
  0xb4   :  { %403 = vmatmul.mubr.bf16.vlgmr.msra.gmra.mrb[0].mxu0 %v177_v36  ;;  %444 = vmatmul.mubr.bf16.vlgmr.msra.gmra.mrb[0].mxu1 %v177_v36 }
  0xb5   :  { %613 = vmatpush1.bf16.msra.mxu0 %v1077_v37  ;;  %654 = vmatpush1.bf16.msra.mxu1 %v1080_v38 }
  0xb6   :  { %614 = vmatprep.subr.bf16.mxu0 %v1085_v39  ;;  %655 = vmatprep.subr.bf16.mxu1 %v1088_v40  ;;  %v706_v40 = vsub.s32 2, %v697_v23 }
  0xb7   :  { %644 = vmatprep.mubr.bf16.mxu0 %v1417_v0  ;;  %685 = vmatprep.mubr.bf16.mxu1 %v1417_v0  ;;  %v1124_v0 = vld [vmem:[#allocation8 + $0xec] ss:$16 sps:$4 sm:$0xff]  }
  0xb9   :  { %615 = vmatpush1.bf16.msra.mxu0 %v1083_v41  ;;  %656 = vmatpush1.bf16.msra.mxu1 %v1086_v42 }
  0xba   :  { %616 = vmatprep.subr.bf16.mxu0 %v1091_v43  ;;  %657 = vmatprep.subr.bf16.mxu1 %v1094_v44 }
  0xbd   :  { %617 = vmatpush1.bf16.msra.mxu0 %v1089_v45  ;;  %658 = vmatpush1.bf16.msra.mxu1 %v1092_v46  ;;  %v707_v46 = vrot.slane %v694_v25, %v706_v40 }
  0xbe   :  { %618 = vmatprep.subr.bf16.mxu0 %v1097_v47  ;;  %659 = vmatprep.subr.bf16.mxu1 %v1100_v48  ;;  %v710_v47 = vsub.s32 3, %v697_v23 }
  0xc1   :  { %619 = vmatpush1.bf16.msra.mxu0 %v1095_v49  ;;  %660 = vmatpush1.bf16.msra.mxu1 %v1098_v50  ;;  %v711_v49 = vrot.slane %v694_v25, %v710_v47 }
  0xc2   :  { %620 = vmatprep.subr.bf16.mxu0 %v1103_v51  ;;  %661 = vmatprep.subr.bf16.mxu1 %v1106_v52 }
  0xc5   :  { %621 = vmatpush1.bf16.msra.mxu0 %v1101_v53  ;;  %662 = vmatpush1.bf16.msra.mxu1 %v1104_v54 }
  0xc6   :  { %622 = vmatprep.subr.bf16.mxu0 %v1109_v55  ;;  %663 = vmatprep.subr.bf16.mxu1 %v1112_v56  ;;  %v140_v56 = vld [vmem:[#allocation5] sm:$0xff] }
  0xc9   :  { %623 = vmatpush1.bf16.msra.mxu0 %v1107_v57  ;;  %664 = vmatpush1.bf16.msra.mxu1 %v1110_v58 }
  0xca   :  { %624 = vmatprep.subr.bf16.mxu0 %v1115_v59  ;;  %665 = vmatprep.subr.bf16.mxu1 %v1118_v60 }
  0xcd   :  { %625 = vmatpush1.bf16.msra.mxu0 %v1113_v61  ;;  %666 = vmatpush1.bf16.msra.mxu1 %v1116_v62 }
  0xce   :  { %626 = vmatprep.subr.bf16.mxu0 %v1121_v63  ;;  %667 = vmatprep.subr.bf16.mxu1 %v1124_v0 }
  0xd1   :  { %627 = vmatpush1.bf16.msra.mxu0 %v1119_v1  ;;  %668 = vmatpush1.bf16.msra.mxu1 %v1122_v2 }
  0xd2   :  { %991 = vmatprep.subr.bf16.mxu0 %v1418_v6 }
  0xd4   :  { %645 = vmatmul.mubr.bf16.vlgmr.msra.gmra.mrb[4].mxu0 %v143_v4  ;;  %686 = vmatmul.mubr.bf16.vlgmr.msra.gmra.mrb[4].mxu1 %v143_v4 }
  0xd5   :  { %992 = vmatpush3.bf16.msra.mxu0 %v1125_v5  ;;  %1007 = vmatprep.mubr.msk.bf16.mxu0 %vm1419_vm0, %v1418_v6 }
  0xd6   :  { %993 = vmatprep.subr.bf16.mxu0 %v1418_v6 }
  0xd9   :  { %994 = vmatpush3.bf16.msra.mxu0 %v1126_v7 }
  0xda   :  { %995 = vmatprep.subr.bf16.mxu0 %v1418_v6 }
  0xdd   :  { %996 = vmatpush3.bf16.msra.mxu0 %v1127_v8 }
  0xde   :  { %997 = vmatprep.subr.bf16.mxu0 %v1418_v6 }
  0xe1   :  { %998 = vmatpush3.bf16.msra.mxu0 %v1128_v9 }
  0xe2   :  { %999 = vmatprep.subr.bf16.mxu0 %v1418_v6 }
  0xe5   :  { %1000 = vmatpush3.bf16.msra.mxu0 %v1129_v10 }
  0xe6   :  { %1001 = vmatprep.subr.bf16.mxu0 %v1418_v6 }
  0xe9   :  { %1002 = vmatpush3.bf16.msra.mxu0 %v1130_v11 }
  0xea   :  { %1003 = vmatprep.subr.bf16.mxu0 %v1418_v6 }
  0xed   :  { %1004 = vmatpush3.bf16.msra.mxu0 %v1131_v12 }
  0xee   :  { %1005 = vmatprep.subr.bf16.mxu0 %v1418_v6 }
  0xf1   :  { %1006 = vmatpush3.bf16.msra.mxu0 %v1132_v13 }
 0x187   :  { %v404_v14 = vpop.f32.mrb[0].mxu0  ;;  %v445_v15 = vpop.f32.mrb[0].mxu1 }
 0x188   :  { %v406_v16 = vpop.f32.mrb[1].mxu0  ;;  %v447_v17 = vpop.f32.mrb[1].mxu1 }
 0x189   :  { %v408_v18 = vpop.f32.mrb[2].mxu0  ;;  %v449_v19 = vpop.f32.mrb[2].mxu1 }
 0x18a   :  { %v409_v20 = vpop.f32.mrb[3].mxu0  ;;  %v450_v21 = vpop.f32.mrb[3].mxu1 }
 0x1a7   :  { %v646_v28 = vpop.f32.mrb[4].mxu0  ;;  %v687_v29 = vpop.f32.mrb[4].mxu1 }
 0x1a8   :  { %v647_v31 = vadd.f32 %v646_v28, %v404_v14  ;;  %v688_v32 = vadd.f32 %v687_v29, %v445_v15  ;;  %v648_v33 = vpop.f32.mrb[5].mxu0  ;;  %v689_v34 = vpop.f32.mrb[5].mxu1 }
 0x1a9   :  { %v649_v35 = vadd.f32 %v648_v33, %v406_v16  ;;  %v690_v36 = vadd.f32 %v689_v34, %v447_v17  ;;  %v650_v37 = vpop.f32.mrb[6].mxu0  ;;  %v691_v38 = vpop.f32.mrb[6].mxu1 }
 0x1aa   :  { %v716_v39 = vadd.f32 %v699_v27, %v647_v31  ;;  %v651_v41 = vpop.f32.mrb[7].mxu0  ;;  %v692_v42 = vpop.f32.mrb[7].mxu1  ;;  %v718_v48 = vadd.f32 %v707_v46, %v688_v32 }
 0x1ab   :  { %v717_v43 = vadd.f32 %v703_v30, %v649_v35  ;;  %v719_v52 = vadd.f32 %v711_v49, %v690_v36 }
 0x1ac   :  { %v970_v44 = vmul.f32 -1.442695, %v716_v39  ;;  %v972_v50 = vmul.f32 -1.442695, %v718_v48 }
 0x1ad   :  { %v971_v45 = vmul.f32 -1.442695, %v717_v43 }
 0x1ae   :  { %1133 = vpow2.f32 %v970_v44 }
 0x1af   :  { %1135 = vpow2.f32 %v971_v45 }
 0x1b0   :  { %1137 = vpow2.f32 %v972_v50 }
 0x1b8   :  { %v1134_v51 = vpop.eup %1133 }
 0x1b9   :  { %v723_v53 = vadd.f32 1.0, %v1134_v51  ;;  %v1136_v54 = vpop.eup %1135 }
 0x1ba   :  { %v729_v55 = vadd.f32 1.0, %v1136_v54  ;;  %v1138_v57 = vpop.eup %1137 }
 0x1bb   :  { %1139 = vrcp.f32 %v723_v53  ;;  %v735_v62 = vadd.f32 1.0, %v1138_v57 }
 0x1bc   :  { %1141 = vtanh.f32 %v719_v52 }
 0x1bd   :  { %1143 = vrcp.f32 %v729_v55 }
 0x1be   :  { %1145 = vrcp.f32 %v735_v62 }
 0x1c5   :  { %v1140_v58 = vpop.eup %1139 }
 0x1c6   :  { %v1142_v59 = vpop.eup %1141  ;;  %v740_v60 = vmul.f32 %v1140_v58, %v140_v56 }
 0x1c7   :  { %v1144_v61 = vpop.eup %1143 }
 0x1c8   :  { %v741_v63 = vmul.f32 %v1144_v61, %v1142_v59  ;;  %v1146_v1 = vpop.eup %1145 }
 0x1ca   :  { %v742_v0 = vadd.f32 %v741_v63, %v740_v60 }
 0x1cc   :  { %1147 = vtanh.f32 %v742_v0  ;;  %858 = vst [vmem:[#allocation17] sm:$0xff] %v742_v0 }
 0x1d6   :  { %v1148_v2 = vpop.eup %1147 }
 0x1d7   :  { %v744_v3 = vmul.f32 %v1148_v2, %v1146_v1 }
 0x1d9   :  { %v745_v4 = vpack.c.bf16 %v744_v3, %v744_v3  ;;  %857 = vst [vmem:[#allocation16] sm:$0xff] %v744_v3 }
 0x1db   :  { %1008 = vmatmul.mubr.bf16.vlgmr.msra.gmra.mrb[8].mxu0 %v745_v4 }
 0x1dc   :  { %1336 = shalt.err (!%p1333_p12)
}
 0x1dd   :  { %s1337_s16 = scalar_lea.hbm %s1643_s9, 128 }
 0x1de   :  { %p1338_p13 = scmp.ne.s32.totalorder %s1643_s9, %s1337_s16  ;;  %p1341_p0 = scmp.lt.u32.totalorder %s1337_s16, %s1643_s9 }
 0x1e0   :  { %p1343_p1 = pnand %p1341_p0, %p1338_p13 }
 0x1e2   :  { %1346 = shalt.err (!%p1343_p1)
}
 0x1e3   :  { %879 = dma.vmem_to_hbm [thread:$0]  %s877_s24, 128, %s1643_s9, [#allocation18]  }
 0x1e4   :  { %s1347_s26 = scalar_lea.vmem %s867_s27, 128  ;;  %p1352_p3 = scmp.lt.s32.totalorder %s867_s27, %s867_s27 }
 0x1e5   :  { %p1348_p2 = scmp.ne.s32.totalorder %s867_s27, %s1347_s26  ;;  %p1353_p4 = scmp.lt.s32.totalorder %s1347_s26, %s1347_s26 }
 0x1e7   :  { %p1354_p5 = por %p1353_p4, %p1352_p3 }
 0x1e9   :  { %p1355_p6 = pnand %p1354_p5, %p1348_p2 }
 0x1eb   :  { %1358 = shalt.err (!%p1355_p6)
}
 0x1ec   :  { %s1359_s13 = scalar_lea.hbm %s1642_s8, 128 }
 0x1ed   :  { %p1360_p7 = scmp.ne.s32.totalorder %s1642_s8, %s1359_s13  ;;  %p1363_p8 = scmp.lt.u32.totalorder %s1359_s13, %s1642_s8 }
 0x1ef   :  { %p1365_p9 = pnand %p1363_p8, %p1360_p7 }
 0x1f1   :  { %1368 = shalt.err (!%p1365_p9)
}
 0x1f2   :  { %869 = dma.vmem_to_hbm [thread:$0]  %s867_s27, 128, %s1642_s8, [#allocation4]   ;;  %v973_v5 = vld [vmem:[#allocation14] ss:$0 sm:$0xff] }
 0x1f3   :  { %s1422_s5 = smov [#allocation19]  }
 0x1f4   :  { %s886_s20 = sshll.u32 %s1422_s5, 4  ;;  %s887_s20 = int_to_ptr.vmem [resolvable:$true] %s886_s20 }
 0x1f5   :  { %s1369_s6 = scalar_lea.vmem %s887_s20, 128  ;;  %p1374_p11 = scmp.lt.s32.totalorder %s887_s20, %s887_s20 }
 0x1f6   :  { %p1370_p10 = scmp.ne.s32.totalorder %s887_s20, %s1369_s6  ;;  %p1375_p12 = scmp.lt.s32.totalorder %s1369_s6, %s1369_s6 }
 0x1f8   :  { %p1376_p13 = por %p1375_p12, %p1374_p11 }
 0x1fa   :  { %p1377_p0 = pnand %p1376_p13, %p1370_p10 }
 0x2ae   :  { %v851_v6 = vpop.f32.mrb[8].mxu0 }
 0x2af   :  { %v852_v7 = vadd.f32 %v973_v5, %v851_v6  ;;  %v1009_v8 = vpop.f32.mrb[9].mxu0 }
 0x2b0   :  { %v854_v9 = vpop.f32.mrb[10].mxu0 }
 0x2b1   :  { %859 = vst [vmem:[#allocation19] sm:$0xff] %v852_v7  ;;  %v1010_v10 = vpop.f32.mrb[11].mxu0 }
 0x2b2   :  { %1380 = shalt.err (!%p1377_p0)
}
 0x2b3   :  { %s1381_s8 = scalar_lea.hbm %s1644_s10, 128 }
 0x2b4   :  { %p1382_p1 = scmp.ne.s32.totalorder %s1644_s10, %s1381_s8  ;;  %p1385_p2 = scmp.lt.u32.totalorder %s1381_s8, %s1644_s10 }
 0x2b6   :  { %p1387_p3 = pnand %p1385_p2, %p1382_p1 }
 0x2b8   :  { %1390 = shalt.err (!%p1387_p3)
}
 0x2b9   :  { %889 = dma.vmem_to_hbm [thread:$0]  %s887_s20, 128, %s1644_s10, [#allocation18]  }
 0x2ba   :  { %1401 = dma.done.wait [#allocation4], 128  }
 0x2bb   :  { %1402 = vsyncadd [#allocation4], 4294967168 }
 0x2bc   :  { %1403 = dma.done.wait [#allocation18], 256  }
 0x2bd   :  { %1404 = vsyncadd [#allocation18], 4294967040 }
 0x2be   :  { %899 = vsyncpa [#allocation3], 1 }
 0x2bf   :  { %900 = vsyncpa [#allocation6], 1 }
 0x2c0   :  { %901 = vsyncpa [#allocation9], 1 }
 0x2c1   :  { %902 = vsyncpa [#allocation12], 1 }
 0x2c2   :  { %903 = vsyncpa [#allocation15], 1 }
 0x2c3   :  { %904 = vsyncpa [#allocation4], 1 }
 0x2c4   :  { %905 = vsyncpa [#allocation18], 1 }

</bundles_post_ra>
